<compile_context>
chip_gen: v7x
topology: tpu7x:2x2x1
jax: 0.10.0
libtpu: 0.0.40
codegen_flags: <defaults>
</compile_context>

<pallas_src>
import functools
import math

import jax
import jax.numpy as jnp
from jax.experimental import pallas as pl
from jax.experimental.pallas import tpu as pltpu


# ---------------------------------------------------------------------------
# Activations (applied inside kernels)
# ---------------------------------------------------------------------------
_ACT_TYPES = ("ReLU", "Tanh", "Sigmoid", "GELU", "Identity")


def _apply_act(y, act):
    if act is None or act == "Identity":
        return y
    if act == "ReLU":
        return jnp.maximum(y, 0.0)
    if act == "Tanh":
        return jnp.tanh(y)
    if act == "Sigmoid":
        return jax.nn.sigmoid(y)
    if act == "GELU":
        return jax.nn.gelu(y)
    raise ValueError(f"unsupported activation {act}")


# ---------------------------------------------------------------------------
# Linear (+ fused activation) kernel
# ---------------------------------------------------------------------------
def _linear_kernel(x_ref, w_ref, b_ref, o_ref, acc_ref, *, act):
    k = pl.program_id(2)

    @pl.when(k == 0)
    def _init():
        acc_ref[...] = jnp.zeros_like(acc_ref)

    acc_ref[...] += jnp.dot(
        x_ref[...], w_ref[...], preferred_element_type=jnp.float32)

    @pl.when(k == pl.num_programs(2) - 1)
    def _finish():
        y = acc_ref[...] + b_ref[...].astype(jnp.float32)
        o_ref[...] = _apply_act(y, act).astype(o_ref.dtype)


def _round_up(x, m):
    return (x + m - 1) // m * m


def linear_pallas(x, w, b, act=None):
    """y = act(x @ w + b); x: (..., K), w: (K, N), b: (N,)."""
    *lead, K = x.shape
    Kw, N = w.shape
    assert K == Kw, (K, Kw)
    x2 = x.reshape(-1, K)
    M = x2.shape[0]
    dtype = x.dtype

    # Tile sizes: full-dim blocks in the (small) typical case, MXU-friendly
    # 256/512-wide tiles with exact zero padding when dims are large.
    if M <= 256:
        tm, Mp = M, M
    else:
        tm, Mp = 256, _round_up(M, 256)
    if N <= 256:
        tn, Np = N, N
    else:
        tn, Np = 256, _round_up(N, 256)
    if K <= 1024:
        tk, Kp = K, K
    else:
        tk, Kp = 512, _round_up(K, 512)

    xp = x2 if (Mp == M and Kp == K) else jnp.pad(x2, ((0, Mp - M), (0, Kp - K)))
    wp = w if (Kp == K and Np == N) else jnp.pad(w, ((0, Kp - K), (0, Np - N)))
    bp = (b if Np == N else jnp.pad(b, (0, Np - N))).reshape(1, Np)

    grid = (Mp // tm, Np // tn, Kp // tk)

    out = pl.pallas_call(
        functools.partial(_linear_kernel, act=act),
        out_shape=jax.ShapeDtypeStruct((Mp, Np), dtype),
        grid_spec=pltpu.PrefetchScalarGridSpec(
            num_scalar_prefetch=0,
            grid=grid,
            in_specs=[
                pl.BlockSpec((tm, tk), lambda i, j, k: (i, k)),
                pl.BlockSpec((tk, tn), lambda i, j, k: (k, j)),
                pl.BlockSpec((1, tn), lambda i, j, k: (0, j)),
            ],
            out_specs=pl.BlockSpec((tm, tn), lambda i, j, k: (i, j)),
            scratch_shapes=[pltpu.VMEM((tm, tn), jnp.float32)],
        ),
        compiler_params=pltpu.CompilerParams(
            dimension_semantics=("parallel", "parallel", "arbitrary"),
            vmem_limit_bytes=32 * 1024 * 1024,
        ),
    )(xp, wp, bp)

    if Mp != M or Np != N:
        out = out[:M, :N]
    return out.reshape(*lead, N)


# ---------------------------------------------------------------------------
# Standalone elementwise activation kernel (when not fused into a Linear)
# ---------------------------------------------------------------------------
def _eltwise_kernel(x_ref, o_ref, *, act):
    o_ref[...] = _apply_act(x_ref[...].astype(jnp.float32), act).astype(o_ref.dtype)


_LANE_CANDIDATES = (4096, 2048, 1024, 512, 256, 128)
_TARGET_BLOCK_BYTES = 2 * 1024 * 1024


def eltwise_pallas(x, act):
    orig_shape = x.shape
    dtype = x.dtype
    total = x.size
    itemsize = jnp.dtype(dtype).itemsize

    # Widest lane dim that divides total -> lane-dense, unpadded common case.
    lane = 128
    for cand in _LANE_CANDIDATES:
        if total % cand == 0:
            lane = cand
            break
    pad = (-total) % lane                      # trace-time constant
    flat = x.reshape(-1)
    if pad:
        flat = jnp.pad(flat, (0, pad))         # sliced off afterwards: exact
    rows = (total + pad) // lane
    x2 = flat.reshape(rows, lane)

    min_sub = max(8, 32 // itemsize)           # dtype-aware sublane multiple
    block_rows = max(
        min_sub, (_TARGET_BLOCK_BYTES // (lane * itemsize)) // min_sub * min_sub)
    if block_rows >= rows:
        block_rows = rows                      # single block == full extent
    grid = (pl.cdiv(rows, block_rows),)

    out2 = pl.pallas_call(
        functools.partial(_eltwise_kernel, act=act),
        out_shape=jax.ShapeDtypeStruct((rows, lane), dtype),
        grid_spec=pltpu.PrefetchScalarGridSpec(
            num_scalar_prefetch=0,
            grid=grid,
            in_specs=[pl.BlockSpec((block_rows, lane), lambda i: (i, 0))],
            out_specs=pl.BlockSpec((block_rows, lane), lambda i: (i, 0)),
        ),
        compiler_params=pltpu.CompilerParams(
            dimension_semantics=("parallel",),
            vmem_limit_bytes=32 * 1024 * 1024,
        ),
    )(x2)

    out_flat = out2.reshape(-1)
    if pad:
        out_flat = out_flat[:total]
    return out_flat.reshape(orig_shape)


# ---------------------------------------------------------------------------
# Config-driven Network (mirrors NNTools.Network)
# ---------------------------------------------------------------------------
class Network:
    """Builds a Sequential-like stack from a config list and runs it with
    Pallas kernels. Activations directly following a Linear are fused into
    that Linear's kernel."""

    def __init__(self, config, *, key, dtype=jnp.float32):
        self._layers = []   # ["linear", W, b, fused_act] | ["act", name]
        for configuration in config:
            ltype = configuration["type"]
            kwargs = configuration.get("kwargs", {})
            if ltype == "Linear":
                in_f = kwargs["in_features"]
                out_f = kwargs["out_features"]
                use_bias = kwargs.get("bias", True)
                key, wkey, bkey = jax.random.split(key, 3)
                bound = 1.0 / math.sqrt(in_f)
                # torch stores weight as (out, in) and computes x @ W.T + b;
                # we store it pre-transposed as (in, out): same math.
                w = jax.random.uniform(wkey, (in_f, out_f), dtype,
                                       minval=-bound, maxval=bound)
                if use_bias:
                    bvec = jax.random.uniform(bkey, (out_f,), dtype,
                                              minval=-bound, maxval=bound)
                else:
                    bvec = jnp.zeros((out_f,), dtype)
                self._layers.append(["linear", w, bvec, None])
            elif ltype in _ACT_TYPES:
                if ltype == "Identity":
                    continue
                if (self._layers and self._layers[-1][0] == "linear"
                        and self._layers[-1][3] is None):
                    self._layers[-1][3] = ltype          # fuse into the Linear
                else:
                    self._layers.append(["act", ltype])  # standalone kernel
            else:
                raise ValueError(
                    f"Failed reading configuration {configuration!r}: layer "
                    f"type {ltype!r} not supported in the Pallas port")

    def __call__(self, x):
        return self.forward(x)

    def forward(self, x):
        for layer in self._layers:
            if layer[0] == "linear":
                _, w, b, act = layer
                x = linear_pallas(x, w, b, act)
            else:
                x = eltwise_pallas(x, layer[1])
        return x

    def reference(self, x):
        """Pure-jnp reference of the same forward (for verification)."""
        for layer in self._layers:
            if layer[0] == "linear":
                _, w, b, act = layer
                x2 = x.reshape(-1, w.shape[0])
                y = jnp.dot(x2, w, precision=jax.lax.Precision.HIGHEST) + b
                y = _apply_act(y, act)
                x = y.reshape(*x.shape[:-1], w.shape[1])
            else:
                x = _apply_act(x, layer[1])
        return x


if __name__ == "__main__":
    key = jax.random.PRNGKey(0)
    key, knet, kx, ky = jax.random.split(key, 4)

    # Config-driven MLP: every activation fuses into its preceding Linear.
    config = [
        {"type": "Linear", "kwargs": {"in_features": 32, "out_features": 64}},
        {"type": "ReLU", "kwargs": {}},
        {"type": "Linear", "kwargs": {"in_features": 64, "out_features": 64}},
        {"type": "Tanh", "kwargs": {}},
        {"type": "Linear", "kwargs": {"in_features": 64, "out_features": 32}},
        {"type": "Sigmoid", "kwargs": {}},
    ]
    net = Network(config, key=knet)

    x = jax.random.normal(kx, (2, 8, 32), dtype=jnp.float32)  # (batch, seq, hidden)
    out = net(x)
    jax.block_until_ready(out)
    assert out.shape == (2, 8, 32)
    ref = net.reference(x)
    assert jnp.allclose(out, ref, atol=1e-2, rtol=1e-2), \
        float(jnp.abs(out - ref).max())

    # Config with a bare activation: exercises the standalone elementwise kernel.
    act_net = Network([{"type": "ReLU", "kwargs": {}}], key=key)
    y = jax.random.normal(ky, (2, 4, 16, 16), dtype=jnp.float32)
    out_act = act_net(y)
    jax.block_until_ready(out_act)
    assert out_act.shape == y.shape
    assert jnp.allclose(out_act, jnp.maximum(y, 0.0), atol=1e-6, rtol=1e-6)

    print("KERNEL_OK")
</pallas_src>

<mosaic_0001>
module attributes {stable_mosaic.version = 11 : i64} {
  func.func @_linear_kernel(%arg0: i32, %arg1: i32, %arg2: i32, %arg3: memref<16x32xf32, #tpu.memory_space<vmem>>, %arg4: memref<32x64xf32, #tpu.memory_space<vmem>>, %arg5: memref<1x64xf32, #tpu.memory_space<vmem>>, %arg6: memref<16x64xf32, #tpu.memory_space<vmem>>, %arg7: memref<16x64xf32, #tpu.memory_space<vmem>>) attributes {dimension_semantics = [#tpu.dimension_semantics<parallel>, #tpu.dimension_semantics<parallel>, #tpu.dimension_semantics<arbitrary>], iteration_bounds = array<i64: 1, 1, 1>, scalar_prefetch = 0 : i64, scratch_operands = 1 : i64, tpu.core_type = #tpu.core_type<tc>, window_params = [{transform_indices = @transform_0, window_bounds = array<i64: 16, 32>}, {transform_indices = @transform_1, window_bounds = array<i64: 32, 64>}, {transform_indices = @transform_2, window_bounds = array<i64: 1, 64>}, {transform_indices = @transform_3, window_bounds = array<i64: 16, 64>}]} {
    %c0_i32 = arith.constant 0 : i32
    %0 = arith.cmpi eq, %arg2, %c0_i32 : i32
    %1 = arith.extui %0 : i1 to i32
    %c0_i32_0 = arith.constant 0 : i32
    %2 = arith.cmpi ne, %1, %c0_i32_0 : i32
    scf.if %2 {
      %cst_10 = arith.constant 0.000000e+00 : f32
      %12 = vector.broadcast %cst_10 : f32 to vector<16x64xf32>
      %c0_11 = arith.constant 0 : index
      %c0_12 = arith.constant 0 : index
      %13 = vector.load %arg7[%c0_11, %c0_12] : memref<16x64xf32, #tpu.memory_space<vmem>>, vector<16x64xf32>
      tpu.vector_store %arg7[%c0_11, %c0_12], %12 {strides = array<i32>} : memref<16x64xf32, #tpu.memory_space<vmem>>, vector<16x64xf32>,
    } else {
    }
    %c0 = arith.constant 0 : index
    %c0_1 = arith.constant 0 : index
    %3 = vector.load %arg7[%c0, %c0_1] : memref<16x64xf32, #tpu.memory_space<vmem>>, vector<16x64xf32>
    %c0_2 = arith.constant 0 : index
    %c0_3 = arith.constant 0 : index
    %4 = vector.load %arg3[%c0_2, %c0_3] : memref<16x32xf32, #tpu.memory_space<vmem>>, vector<16x32xf32>
    %c0_4 = arith.constant 0 : index
    %c0_5 = arith.constant 0 : index
    %5 = vector.load %arg4[%c0_4, %c0_5] : memref<32x64xf32, #tpu.memory_space<vmem>>, vector<32x64xf32>
    %cst = arith.constant dense<0.000000e+00> : vector<16x64xf32>
    %6 = tpu.matmul %4, %5, %cst {dimension_numbers = #tpu.dot_dimension_numbers<[1], [0], [0], [1], [0, 0, 1, 1], [], []>} : vector<16x32xf32>, vector<32x64xf32>, vector<16x64xf32> -> vector<16x64xf32>
    %7 = arith.addf %3, %6 : vector<16x64xf32>
    %c0_6 = arith.constant 0 : index
    %c0_7 = arith.constant 0 : index
    %8 = vector.load %arg7[%c0_6, %c0_7] : memref<16x64xf32, #tpu.memory_space<vmem>>, vector<16x64xf32>
    tpu.vector_store %arg7[%c0_6, %c0_7], %7 {strides = array<i32>} : memref<16x64xf32, #tpu.memory_space<vmem>>, vector<16x64xf32>,
    %c0_i32_8 = arith.constant 0 : i32
    %9 = arith.cmpi eq, %arg2, %c0_i32_8 : i32
    %10 = arith.extui %9 : i1 to i32
    %c0_i32_9 = arith.constant 0 : i32
    %11 = arith.cmpi ne, %10, %c0_i32_9 : i32
    scf.if %11 {
      %c0_10 = arith.constant 0 : index
      %c0_11 = arith.constant 0 : index
      %12 = vector.load %arg7[%c0_10, %c0_11] : memref<16x64xf32, #tpu.memory_space<vmem>>, vector<16x64xf32>
      %c0_12 = arith.constant 0 : index
      %c0_13 = arith.constant 0 : index
      %13 = vector.load %arg5[%c0_12, %c0_13] : memref<1x64xf32, #tpu.memory_space<vmem>>, vector<1x64xf32>
      %14 = vector.broadcast %13 : vector<1x64xf32> to vector<16x64xf32>
      %15 = arith.addf %12, %14 : vector<16x64xf32>
      %cst_14 = arith.constant 0.000000e+00 : f32
      %16 = vector.broadcast %cst_14 : f32 to vector<16x64xf32>
      %17 = arith.maximumf %15, %16 : vector<16x64xf32>
      %c0_15 = arith.constant 0 : index
      %c0_16 = arith.constant 0 : index
      %18 = vector.load %arg6[%c0_15, %c0_16] : memref<16x64xf32, #tpu.memory_space<vmem>>, vector<16x64xf32>
      tpu.vector_store %arg6[%c0_15, %c0_16], %17 {strides = array<i32>} : memref<16x64xf32, #tpu.memory_space<vmem>>, vector<16x64xf32>,
    } else {
    }
    return
  }
  func.func @transform_0(%arg0: i32, %arg1: i32, %arg2: i32) -> (i32, i32) {
    %c0_i32 = arith.constant 0 : i32
    return %arg0, %arg2 : i32, i32
  }
  func.func @transform_1(%arg0: i32, %arg1: i32, %arg2: i32) -> (i32, i32) {
    %c0_i32 = arith.constant 0 : i32
    return %arg2, %arg1 : i32, i32
  }
  func.func @transform_2(%arg0: i32, %arg1: i32, %arg2: i32) -> (i32, i32) {
    %c0_i32 = arith.constant 0 : i32
    %c0_i32_0 = arith.constant 0 : i32
    return %c0_i32, %arg1 : i32, i32
  }
  func.func @transform_3(%arg0: i32, %arg1: i32, %arg2: i32) -> (i32, i32) {
    %c0_i32 = arith.constant 0 : i32
    return %arg0, %arg1 : i32, i32
  }
}

</mosaic_0001>

<bundles_post_ra>
// kernel: tpu_custom_call.1
= control target key start
LH: loop header
LB: loop body
LE: loop exit
PB: predicated region body
PF: predicated region fallthrough
CT: control target
= control target key end

     0   :  { %8 = vsyncpa [#allocation4], 0  ;;  %s367_s0 = inlined_call_operand.hbm [shape: f32[16,32], index: 0, kind: input, shape index: {}]   ;;  %s368_s1 = inlined_call_operand.hbm [shape: f32[32,64], index: 1, kind: input, shape index: {}]   ;;  %s369_s2 = inlined_call_operand.vmem [shape: f32[1,64], index: 2, kind: input, shape index: {}]   ;;  %s370_s3 = inlined_call_operand.hbm [shape: f32[16,64], index: 3, kind: output, shape index: {}]  }
   0x1   :  { %9 = vsyncpa [#allocation7], 0 }
   0x2   :  { %10 = vsyncpa [#allocation5], 0  ;;  %s287_s12 = smov [#allocation3]   ;;  %s215_s16 = scalar_lea.hbm %s367_s0, 256 }
   0x3   :  { %s16_s13 = sshll.u32 %s287_s12, 4  ;;  %p216_p0 = scmp.ne.s32.totalorder %s367_s0, %s215_s16  ;;  %s17_s13 = int_to_ptr.vmem [resolvable:$true] %s16_s13 }
   0x4   :  { %p219_p1 = scmp.lt.u32.totalorder %s215_s16, %s367_s0 }
   0x6   :  { %p221_p2 = pnand %p219_p1, %p216_p0 }
   0x8   :  { %224 = shalt.err (!%p221_p2)
}
   0x9   :  { %s225_s21 = scalar_lea.vmem %s17_s13, 256  ;;  %p230_p4 = scmp.lt.s32.totalorder %s17_s13, %s17_s13 }
   0xa   :  { %p226_p3 = scmp.ne.s32.totalorder %s17_s13, %s225_s21  ;;  %p231_p5 = scmp.lt.s32.totalorder %s225_s21, %s225_s21 }
   0xc   :  { %p232_p6 = por %p231_p5, %p230_p4 }
   0xe   :  { %p233_p7 = pnand %p232_p6, %p226_p3 }
  0x10   :  { %236 = shalt.err (!%p233_p7)
}
  0x11   :  { %s288_s22 = smov 128   ;;  %s289_s23 = smov 8  }
  0x12   :  { %22 = dma.hbm_to_vmem [thread:$0]  %s367_s0, 256, %s17_s13, [#allocation4], %s288_s22, %s288_s22, %s289_s23  }
  0x13   :  { %s290_s26 = smov [#allocation6]   ;;  %s237_s30 = scalar_lea.hbm %s368_s1, 512 }
  0x14   :  { %s28_s27 = sshll.u32 %s290_s26, 4  ;;  %p238_p8 = scmp.ne.s32.totalorder %s368_s1, %s237_s30  ;;  %s29_s27 = int_to_ptr.vmem [resolvable:$true] %s28_s27 }
  0x15   :  { %p241_p9 = scmp.lt.u32.totalorder %s237_s30, %s368_s1 }
  0x17   :  { %p243_p10 = pnand %p241_p9, %p238_p8 }
  0x19   :  { %246 = shalt.err (!%p243_p10)
}
  0x1a   :  { %s247_s8 = scalar_lea.vmem %s29_s27, 512  ;;  %p252_p12 = scmp.lt.s32.totalorder %s29_s27, %s29_s27 }
  0x1b   :  { %p248_p11 = scmp.ne.s32.totalorder %s29_s27, %s247_s8  ;;  %p253_p13 = scmp.lt.s32.totalorder %s247_s8, %s247_s8 }
  0x1d   :  { %p254_p0 = por %p253_p13, %p252_p12 }
  0x1f   :  { %p255_p1 = pnand %p254_p0, %p248_p11 }
  0x21   :  { %258 = shalt.err (!%p255_p1)
}
  0x22   :  { %34 = dma.hbm_to_vmem [thread:$0]  %s368_s1, 512, %s29_s27, [#allocation7], %s288_s22, %s288_s22, %s289_s23  }
  0x23   :  { %281 = dma.done.wait [#allocation4], 256  }
  0x24   :  { %282 = vsyncadd [#allocation4], 4294967040 }
  0x25   :  { %283 = dma.done.wait [#allocation7], 512  }
  0x26   :  { %284 = vsyncadd [#allocation7], 4294966784  ;;  %vm47_vm0 = vcmask 523264   ;;  %v291_v0 = vmov 0.0   ;;  %vm58_vm1 = vcmask 261120   ;;  %v54_v1 = vld [vmem:[#allocation6] sm:$0xff] }
  0x27   :  { %49 = vst.msk [vmem:[#allocation2 + $0x8] sm:$0xff] %vm47_vm0, %v291_v0  ;;  %48 = vst.msk [vmem:[#allocation2] sm:$0xff] %vm47_vm0, %v291_v0  ;;  %v55_v2 = vld [vmem:[#allocation6 + $0x8] sm:$0xff]  ;;  %v56_v3 = vld [vmem:[#allocation6 + $0x10] sm:$0xff]  ;;  %s292_s11 = smov [#allocation8]  }
  0x28   :  { %v201_v4 = vpack.c.bf16 %v55_v2, %v54_v1  ;;  %v57_v5 = vld [vmem:[#allocation6 + $0x18] sm:$0xff]  ;;  %v52_v6 = vld [vmem:[#allocation3] sm:$0xff]  ;;  %v183_v15 = vld [vmem:[%s369_s2] ss:$0 sm:$0xff]  ;;  %s168_s12 = sshll.u32 %s292_s11, 4  ;;  %s169_s12 = int_to_ptr.vmem [resolvable:$true] %s168_s12 }
  0x29   :  { %v205_v7 = vpack.c.bf16 %v57_v5, %v56_v3  ;;  %198 = vmatprep.mubr.msk.f32.mxu0 %vm58_vm1, %v52_v6  ;;  %v53_v8 = vld [vmem:[#allocation3 + $0x8] sm:$0xff]  ;;  %s259_s13 = scalar_lea.vmem %s169_s12, 256  ;;  %p264_p3 = scmp.lt.s32.totalorder %s169_s12, %s169_s12 }
  0x2a   :  { %202 = vmatprep.subr.bf16.mxu0 %v201_v4  ;;  %p260_p2 = scmp.ne.s32.totalorder %s169_s12, %s259_s13  ;;  %p265_p4 = scmp.lt.s32.totalorder %s259_s13, %s259_s13 }
  0x2b   :  { %204 = vmatpush3.bf16.msra.mxu0 %v201_v4 }
  0x2c   :  { %206 = vmatprep.subr.bf16.mxu0 %v205_v7  ;;  %p266_p5 = por %p265_p4, %p264_p3 }
  0x2e   :  { %v51_v9 = vld [vmem:[#allocation2 + $0x8] sm:$0xff]  ;;  %v50_v10 = vld [vmem:[#allocation2] sm:$0xff]  ;;  %p267_p6 = pnand %p266_p5, %p260_p2 }
  0x2f   :  { %208 = vmatpush3.bf16.msra.mxu0 %v205_v7 }
  0x32   :  { %199 = vmatmul.mubr.msk.f32.vlgmr.msra.gmra.mrb[0].mxu0 %vm58_vm1, %v53_v8 }
 0x105   :  { %v200_v11 = vpop.f32.mrb[0].mxu0 }
 0x106   :  { %v141_v12 = vadd.f32 %v200_v11, %v51_v9  ;;  %v131_v13 = vpop.f32.mrb[1].mxu0 }
 0x107   :  { %v140_v14 = vadd.f32 %v131_v13, %v50_v10 }
 0x108   :  { %144 = vst.msk [vmem:[#allocation2 + $0x8] sm:$0xff] %vm47_vm0, %v141_v12 }
 0x109   :  { %143 = vst.msk [vmem:[#allocation2] sm:$0xff] %vm47_vm0, %v140_v14 }
 0x10f   :  { %v149_v16 = vld [vmem:[#allocation2 + $0x8] sm:$0xff] }
 0x110   :  { %v148_v17 = vld [vmem:[#allocation2] sm:$0xff]  ;;  %v158_v18 = vadd.f32 %v183_v15, %v149_v16 }
 0x111   :  { %v157_v19 = vadd.f32 %v183_v15, %v148_v17 }
 0x112   :  { %v160_v20 = vmax.f32 %v158_v18, 0.0 }
 0x113   :  { %v159_v21 = vmax.f32 %v157_v19, 0.0 }
 0x114   :  { %162 = vst.msk [vmem:[#allocation8 + $0x8] sm:$0xff] %vm47_vm0, %v160_v20 }
 0x115   :  { %161 = vst.msk [vmem:[#allocation8] sm:$0xff] %vm47_vm0, %v159_v21 }
 0x116   :  { %270 = shalt.err (!%p267_p6)
}
 0x117   :  { %s271_s15 = scalar_lea.hbm %s370_s3, 256 }
 0x118   :  { %p272_p7 = scmp.ne.s32.totalorder %s370_s3, %s271_s15  ;;  %p275_p8 = scmp.lt.u32.totalorder %s271_s15, %s370_s3 }
 0x11a   :  { %p277_p9 = pnand %p275_p8, %p272_p7 }
 0x11c   :  { %280 = shalt.err (!%p277_p9)
}
 0x11d   :  { %174 = dma.vmem_to_hbm [thread:$0]  %s169_s12, 256, %s370_s3, [#allocation5], %s288_s22, %s288_s22, %s289_s23  }
 0x11e   :  { %285 = dma.done.wait [#allocation5], 256  }
 0x11f   :  { %286 = vsyncadd [#allocation5], 4294967040 }
 0x120   :  { %178 = vsyncpa [#allocation4], 1 }
 0x121   :  { %179 = vsyncpa [#allocation7], 1 }
 0x122   :  { %180 = vsyncpa [#allocation5], 1 }

</bundles_post_ra>
